<compile_context>
chip_gen: v5e
topology: v5e:2x2
jax: 0.10.0
libtpu: 0.0.40
codegen_flags: <defaults>
</compile_context>

<pallas_src>
from functools import partial

import jax
import jax.numpy as jnp
from jax.experimental import pallas as pl
from jax.experimental.pallas import tpu as pltpu


# --------------------------------------------------------------------------
# Kernel body
# --------------------------------------------------------------------------
def _studentt2_kernel(x_ref, out1_ref, out2_ref, *, alpha, inv_2alpha,
                      approx_recip):
    # Compute in f32 regardless of storage dtype: the kernel is HBM-bound, so
    # the extra casts are free VALU filler and buy bf16/f8 accuracy (on v5e
    # the VPU/EUP have no bf16 anyway).
    x = x_ref[...].astype(jnp.float32)
    d = 1.0 + alpha * (x * x)
    # Deliberately log(d) (not log1p) to match the torch.log(d) contract.
    out1_ref[...] = (jnp.log(d) * inv_2alpha).astype(out1_ref.dtype)
    if approx_recip:
        # One EUP push instead of a full-precision divide; plenty accurate for
        # <=16-bit outputs and keeps the kernel DMA-bound on v7x where the EUP
        # headroom over the 3.2 TB/s HBM roofline is thin.
        out2_ref[...] = (x * pl.reciprocal(d, approx=True)).astype(out2_ref.dtype)
    else:
        out2_ref[...] = (x / d).astype(out2_ref.dtype)


# --------------------------------------------------------------------------
# Wrapper
# --------------------------------------------------------------------------
def _pick_target_block_bytes() -> int:
    """Generation-aware block-size target (best effort)."""
    try:
        info = pltpu.get_tpu_info()
        vmem = int(getattr(info, "vmem_capacity_bytes", 0) or 0)
        if 0 < vmem <= (64 << 20):
            # v7x-class core (64 MiB VMEM/TC, 3.2 TB/s HBM): bigger blocks to
            # amortize the ~0.35us per-grid-step cost.  6 x 4 MiB pipelined
            # buffers = 24 MiB fits the 32 MiB default scoped limit.
            return 4 << 20
    except Exception:
        pass
    # v5e / v6e (128 MiB physical VMEM): 2 MiB blocks already sit at the HBM
    # roofline, and 6 x 2 MiB = 12 MiB stays inside v5e's 16 MiB default
    # scoped VMEM.
    return 2 << 20


def _studentt2_jnp(x, alpha):
    """Tiny-input fallback: let XLA fuse the three elementwise ops."""
    xf = x.astype(jnp.float32)
    d = 1.0 + alpha * xf * xf
    return (jnp.log(d) / (2.0 * alpha)).astype(x.dtype), (xf / d).astype(x.dtype)


def studentt2(x: jax.Array, alpha: float, *, target_block_bytes: int | None = None,
              min_pallas_bytes: int = 1 << 20):
    """Elementwise StudentT2 forward. Returns (log(d)/(2*alpha), x/d)."""
    orig_shape = x.shape
    dtype = x.dtype
    itemsize = jnp.dtype(dtype).itemsize
    n = int(x.size)

    if n == 0:
        z = jnp.zeros(orig_shape, dtype)
        return z, z
    if n * itemsize < min_pallas_bytes:
        # Kernel launch + pipeline prologue dominates for tiny tensors.
        return _studentt2_jnp(x, alpha)

    if target_block_bytes is None:
        target_block_bytes = _pick_target_block_bytes()

    # Sublane granularity depends on dtype packing: f32 -> 8, bf16 -> 16, 8-bit -> 32.
    sublane = {4: 8, 2: 16, 1: 32}.get(itemsize, 8)
    approx_recip = itemsize < 4  # exact divide for f32; approx recip otherwise
    kernel = partial(
        _studentt2_kernel,
        alpha=float(alpha),
        inv_2alpha=1.0 / (2.0 * float(alpha)),
        approx_recip=approx_recip,
    )

    flat = x.reshape(-1)  # metadata-only for contiguous layouts

    if n % 128 == 0:
        # ---- aligned path: lane-dense 2-D slab, zero-copy --------------------
        lanes = 1024
        if n % lanes != 0:
            for cand in (512, 256, 128):
                if n % cand == 0:
                    lanes = cand
                    break
        rows = n // lanes
        kernel_in = flat.reshape(rows, lanes)

        block_rows = max(
            sublane, (target_block_bytes // (lanes * itemsize)) // sublane * sublane
        )
        if rows >= 4 * sublane:
            # >= 4 grid steps: >= 2 per TensorCore on v7x so each core still
            # double-buffers; on 1-TC chips this still buys DMA/compute overlap
            # for ~1us of extra per-step cost.
            quarter = pl.cdiv(pl.cdiv(rows, 4), sublane) * sublane
            block_rows = min(block_rows, quarter)
        block_rows = min(block_rows, rows)  # full-extent block is always legal

        block_bytes = block_rows * lanes * itemsize
        grid = (pl.cdiv(rows, block_rows),)  # ragged last block is masked
        spec = pl.BlockSpec((block_rows, lanes), lambda i: (i, 0))
        out_sds = jax.ShapeDtypeStruct((rows, lanes), dtype)
    else:
        # ---- misaligned path: flat 1-D blocks, ragged last block masked -----
        # Zero-copy: no jnp.pad of the input and no output slicing, which the
        # old version paid (~3x HBM traffic for misaligned sizes).
        block_n = max(1024, (target_block_bytes // itemsize) // 1024 * 1024)
        if n >= 4 * 1024:
            quarter = pl.cdiv(pl.cdiv(n, 4), 1024) * 1024
            block_n = min(block_n, quarter)
        if block_n >= n:
            block_n = n  # single full-extent block (legal for any n)

        block_bytes = block_n * itemsize
        grid = (pl.cdiv(n, block_n),)
        spec = pl.BlockSpec((block_n,), lambda i: (i,))
        out_sds = jax.ShapeDtypeStruct((n,), dtype)
        kernel_in = flat

    # 1 input + 2 outputs, double-buffered = 6 pipelined buffers; add headroom
    # and clamp to a limit every generation's physical VMEM can honor.
    vmem_limit = min(max(6 * block_bytes + (4 << 20), 16 << 20), 32 << 20)

    cost = pl.CostEstimate(
        flops=5 * n,
        transcendentals=2 * n,
        bytes_accessed=3 * n * itemsize,  # 1 read + 2 writes
    )

    out1, out2 = pl.pallas_call(
        kernel,
        out_shape=(out_sds, out_sds),
        grid=grid,
        in_specs=[spec],
        out_specs=(spec, spec),
        compiler_params=pltpu.CompilerParams(
            dimension_semantics=("parallel",),
            vmem_limit_bytes=vmem_limit,
        ),
        cost_estimate=cost,
    )(kernel_in)

    return out1.reshape(orig_shape), out2.reshape(orig_shape)


# --------------------------------------------------------------------------
# Self-test
# --------------------------------------------------------------------------
def _check(x, alpha, atol, **kw):
    o1, o2 = studentt2(x, alpha, **kw)
    jax.block_until_ready((o1, o2))
    xf = x.astype(jnp.float32)
    d = 1.0 + alpha * xf * xf
    r1 = jnp.log(d) / (2.0 * alpha)
    r2 = xf / d
    assert o1.shape == x.shape and o2.shape == x.shape
    assert o1.dtype == x.dtype and o2.dtype == x.dtype
    assert jnp.allclose(o1.astype(jnp.float32), r1, atol=atol, rtol=atol)
    assert jnp.allclose(o2.astype(jnp.float32), r2, atol=atol, rtol=atol)


if __name__ == "__main__":
    alpha = 0.5  # StudentT2(alpha) hyperparameter
    k1, k2, k3, k4, k5 = jax.random.split(jax.random.PRNGKey(0), 5)

    # 1) Small NCHW input, forced through the kernel (single-block 2-D path).
    x = jax.random.normal(k1, (2, 4, 16, 16), dtype=jnp.float32)
    _check(x, alpha, 1e-6, min_pallas_bytes=0)

    # 2) Multi-block aligned path (~4 grid steps).
    xb = jax.random.normal(k2, (4, 4, 64, 64), dtype=jnp.float32)
    _check(xb, alpha, 1e-6, min_pallas_bytes=0)

    # 3) Misaligned element count -> zero-copy 1-D ragged path (multi-block,
    #    tiny forced block size so the masked last block is exercised).
    xm = jax.random.normal(k3, (5, 2000), dtype=jnp.float32)  # 10000 % 128 != 0
    _check(xm, alpha, 1e-6, min_pallas_bytes=0, target_block_bytes=4096)

    # 3b) Misaligned, single full-extent 1-D block.
    xs = jax.random.normal(k4, (3, 5, 7, 11), dtype=jnp.float32)
    _check(xs, alpha, 1e-6, min_pallas_bytes=0)

    # 4) bf16 input: f32 compute + approx reciprocal inside the kernel.
    xh = jax.random.normal(k5, (2, 4, 16, 16), dtype=jnp.bfloat16)
    _check(xh, alpha, 2e-2, min_pallas_bytes=0)

    # 5) Default small-input fallback (pure jnp) agrees as well.
    _check(x, alpha, 1e-6)

    print("KERNEL_OK")
</pallas_src>

<mosaic_0001>
module attributes {stable_mosaic.version = 11 : i64} {
  func.func @_studentt2_kernel(%arg0: i32, %arg1: memref<2x1024xf32, #tpu.memory_space<vmem>>, %arg2: memref<2x1024xf32, #tpu.memory_space<vmem>>, %arg3: memref<2x1024xf32, #tpu.memory_space<vmem>>) attributes {dimension_semantics = [#tpu.dimension_semantics<parallel>], iteration_bounds = array<i64: 1>, scalar_prefetch = 0 : i64, scratch_operands = 0 : i64, tpu.core_type = #tpu.core_type<tc>, window_params = [{transform_indices = @transform_0, window_bounds = array<i64: 2, 1024>}, {transform_indices = @transform_1, window_bounds = array<i64: 2, 1024>}, {transform_indices = @transform_2, window_bounds = array<i64: 2, 1024>}]} {
    %c0 = arith.constant 0 : index
    %c0_0 = arith.constant 0 : index
    %0 = vector.load %arg1[%c0, %c0_0] : memref<2x1024xf32, #tpu.memory_space<vmem>>, vector<2x1024xf32>
    %1 = arith.mulf %0, %0 : vector<2x1024xf32>
    %cst = arith.constant 5.000000e-01 : f32
    %2 = vector.broadcast %cst : f32 to vector<2x1024xf32>
    %3 = arith.mulf %2, %1 : vector<2x1024xf32>
    %cst_1 = arith.constant 1.000000e+00 : f32
    %4 = vector.broadcast %cst_1 : f32 to vector<2x1024xf32>
    %5 = arith.addf %4, %3 : vector<2x1024xf32>
    %6 = math.log %5 : vector<2x1024xf32>
    %cst_2 = arith.constant 1.000000e+00 : f32
    %7 = vector.broadcast %cst_2 : f32 to vector<2x1024xf32>
    %8 = arith.mulf %6, %7 : vector<2x1024xf32>
    %c0_3 = arith.constant 0 : index
    %c0_4 = arith.constant 0 : index
    %9 = vector.load %arg2[%c0_3, %c0_4] : memref<2x1024xf32, #tpu.memory_space<vmem>>, vector<2x1024xf32>
    tpu.vector_store %arg2[%c0_3, %c0_4], %8 {strides = array<i32>} : memref<2x1024xf32, #tpu.memory_space<vmem>>, vector<2x1024xf32>,
    %10 = arith.divf %0, %5 : vector<2x1024xf32>
    %c0_5 = arith.constant 0 : index
    %c0_6 = arith.constant 0 : index
    %11 = vector.load %arg3[%c0_5, %c0_6] : memref<2x1024xf32, #tpu.memory_space<vmem>>, vector<2x1024xf32>
    tpu.vector_store %arg3[%c0_5, %c0_6], %10 {strides = array<i32>} : memref<2x1024xf32, #tpu.memory_space<vmem>>, vector<2x1024xf32>,
    return
  }
  func.func @transform_0(%arg0: i32) -> (i32, i32) {
    %c0_i32 = arith.constant 0 : i32
    %c0_i32_0 = arith.constant 0 : i32
    return %arg0, %c0_i32 : i32, i32
  }
  func.func @transform_1(%arg0: i32) -> (i32, i32) {
    %c0_i32 = arith.constant 0 : i32
    %c0_i32_0 = arith.constant 0 : i32
    return %arg0, %c0_i32 : i32, i32
  }
  func.func @transform_2(%arg0: i32) -> (i32, i32) {
    %c0_i32 = arith.constant 0 : i32
    %c0_i32_0 = arith.constant 0 : i32
    return %arg0, %c0_i32 : i32, i32
  }
}

</mosaic_0001>

<bundles_post_ra>
// kernel: tpu_custom_call.1
= control target key start
LH: loop header
LB: loop body
LE: loop exit
PB: predicated region body
PF: predicated region fallthrough
CT: control target
= control target key end

     0   :  { %8 = vsyncpa [#allocation3], 0  ;;  %s222_s0 = inlined_call_operand.hbm [shape: f32[2,1024], index: 0, kind: input, shape index: {}]   ;;  %s223_s1 = inlined_call_operand.hbm [shape: f32[2,1024], index: 1, kind: output, shape index: {0}]   ;;  %s224_s2 = inlined_call_operand.hbm [shape: f32[2,1024], index: 2, kind: output, shape index: {1}]  }
   0x1   :  { %9 = vsyncpa [#allocation4], 0 }
   0x2   :  { %10 = vsyncpa [#allocation7], 0  ;;  %s16_s11 = sshll.u32 %s222_s0, 4  ;;  %s194_s12 = smov [#allocation2]   ;;  %s17_s11 = int_to_ptr.hbm [resolvable:$true] %s16_s11 }
   0x3   :  { %s18_s13 = sshll.u32 %s194_s12, 4  ;;  %s19_s13 = int_to_ptr.vmem [resolvable:$true] %s18_s13 }
   0x4   :  { %21 = dma.hbm_to_vmem [thread:$0]  %s17_s11, 256, %s19_s13, [#allocation3]  }
   0x5   :  { %188 = dma.done.wait [#allocation3], 256  }
   0x6   :  { %189 = vsyncadd [#allocation3], 4294967040  ;;  %v26_v0 = vld [vmem:[#allocation2] sm:$0xff]  ;;  %v27_v1 = vld [vmem:[#allocation2 + $0x8] sm:$0xff]  ;;  %s195_s0 = smov [#allocation5]   ;;  %s79_s17 = sshll.u32 %s223_s1, 4  ;;  %s80_s17 = int_to_ptr.hbm [resolvable:$true] %s79_s17 }
   0x7   :  { %v28_v2 = vmul.f32 %v26_v0, %v26_v0  ;;  %v29_v3 = vmul.f32 %v27_v1, %v27_v1  ;;  %s77_s14 = sshll.u32 %s195_s0, 4  ;;  %s196_s1 = smov [#allocation6]   ;;  %s78_s14 = int_to_ptr.vmem [resolvable:$true] %s77_s14 }
   0x8   :  { %s88_s18 = sshll.u32 %s196_s1, 4  ;;  %s90_s21 = sshll.u32 %s224_s2, 4  ;;  %s89_s18 = int_to_ptr.vmem [resolvable:$true] %s88_s18  ;;  %s91_s21 = int_to_ptr.hbm [resolvable:$true] %s90_s21 }
   0x9   :  { %v30_v4 = vmul.f32 0.5, %v28_v2  ;;  %v31_v5 = vmul.f32 0.5, %v29_v3 }
   0xb   :  { %v32_v6 = vadd.f32 1.0, %v30_v4  ;;  %v33_v7 = vadd.f32 1.0, %v31_v5 }
   0xd   :  { %108 = vlog2.f32 %v32_v6  ;;  %vm45_vm0 = vweird.f32 %v32_v6  ;;  %v51_v15 = vand.u32 2147483648, %v32_v6  ;;  %v49_v17 = vand.u32 2147483647, %v32_v6 }
   0xe   :  { %110 = vrcp.f32 %v32_v6  ;;  %vm60_vm2 = vweird.f32 %v33_v7  ;;  %v66_v19 = vand.u32 2147483648, %v33_v7  ;;  %v64_v22 = vand.u32 2147483647, %v33_v7 }
   0xf   :  { %112 = vlog2.f32 %v33_v7  ;;  %v52_v23 = vor.u32 1.1754944e-38, %v51_v15  ;;  %vm50_vm5 = vcmp.eq.f32.partialorder %v49_v17, 8.507059e+37 }
  0x10   :  { %114 = vrcp.f32 %v33_v7  ;;  %v67_v26 = vor.u32 1.1754944e-38, %v66_v19  ;;  %vm65_vm7 = vcmp.eq.f32.partialorder %v64_v22, 8.507059e+37 }
  0x13   :  { %v109_v8 = vpop.eup %108 }
  0x14   :  { %v111_v9 = vpop.eup %110  ;;  %v35_v10 = vmul.f32 0.6931472, %v109_v8 }
  0x15   :  { %v113_v11 = vpop.eup %112  ;;  %v41_v12 = vmul.f32 %v111_v9, %v32_v6  ;;  %vm46_vm1 = vweird.f32 %v111_v9 }
  0x16   :  { %v115_v13 = vpop.eup %114  ;;  %38 = vst [vmem:[#allocation5] sm:$0xff] %v35_v10  ;;  %v37_v14 = vmul.f32 0.6931472, %v113_v11  ;;  %vm47_vm4 = vmor %vm45_vm0, %vm46_vm1 }
  0x17   :  { %v42_v16 = vsub.f32 1.0, %v41_v12  ;;  %v56_v18 = vmul.f32 %v115_v13, %v33_v7  ;;  %vm61_vm3 = vweird.f32 %v115_v13 }
  0x18   :  { %39 = vst [vmem:[#allocation5 + $0x8] sm:$0xff] %v37_v14  ;;  %vm62_vm6 = vmor %vm60_vm2, %vm61_vm3 }
  0x19   :  { %v43_v20 = vmul.f32 %v111_v9, %v42_v16  ;;  %v57_v21 = vsub.f32 1.0, %v56_v18  ;;  %82 = dma.vmem_to_hbm [thread:$0]  %s78_s14, 256, %s80_s17, [#allocation4]  }
  0x1b   :  { %v44_v24 = vadd.f32 %v111_v9, %v43_v20  ;;  %v58_v25 = vmul.f32 %v115_v13, %v57_v21 }
  0x1d   :  { %v48_v27 = vsel %vm47_vm4, %v111_v9, %v44_v24  ;;  %v59_v28 = vadd.f32 %v115_v13, %v58_v25 }
  0x1e   :  { %v53_v29 = vsel %vm50_vm5, %v52_v23, %v48_v27 }
  0x1f   :  { %v54_v30 = vmul.f32 %v53_v29, %v26_v0  ;;  %v63_v31 = vsel %vm62_vm6, %v115_v13, %v59_v28 }
  0x20   :  { %v68_v32 = vsel %vm65_vm7, %v67_v26, %v63_v31 }
  0x21   :  { %70 = vst [vmem:[#allocation6] sm:$0xff] %v54_v30  ;;  %v69_v33 = vmul.f32 %v68_v32, %v27_v1 }
  0x23   :  { %71 = vst [vmem:[#allocation6 + $0x8] sm:$0xff] %v69_v33 }
  0x24   :  { %93 = dma.vmem_to_hbm [thread:$0]  %s89_s18, 256, %s91_s21, [#allocation7]  }
  0x25   :  { %190 = dma.done.wait [#allocation4], 256  }
  0x26   :  { %191 = vsyncadd [#allocation4], 4294967040 }
  0x27   :  { %192 = dma.done.wait [#allocation7], 256  }
  0x28   :  { %193 = vsyncadd [#allocation7], 4294967040 }
  0x29   :  { %102 = vsyncpa [#allocation3], 1 }
  0x2a   :  { %103 = vsyncpa [#allocation4], 1 }
  0x2b   :  { %104 = vsyncpa [#allocation7], 1 }

</bundles_post_ra>
